<compile_context>
chip_gen: v7x
topology: tpu7x:2x2x1
jax: 0.10.0
libtpu: 0.0.40
codegen_flags: <defaults>
</compile_context>

<pallas_src>
import functools

import jax
import jax.numpy as jnp
from jax.experimental import pallas as pl
from jax.experimental.pallas import tpu as pltpu


def _round_up(x, m):
    return ((x + m - 1) // m) * m


def _vmem_capacity_bytes():
    """Physical per-core VMEM; conservative fallback if the query is unavailable."""
    try:
        return int(pltpu.get_tpu_info().vmem_capacity_bytes)
    except Exception:
        return 64 << 20  # v7x per-TensorCore VMEM == smallest across v5e/v6e/v7x


# -----------------------------------------------------------------------------
# Kernel
# -----------------------------------------------------------------------------
def ffn_kernel(x_ref, w1_ref, b1_ref, w2_ref, b2_ref, o_ref, acc_ref, *, tf_eff):
    """Grid = (token tiles i, d_ff tiles f).  For one token tile:
         acc += relu(x @ W1[:, f] + b1[f]) @ W2[f, :]
       and at the last d_ff tile:  o = acc + b2.
    """
    f = pl.program_id(1)

    @pl.when(f == 0)
    def _():
        acc_ref[...] = jnp.zeros_like(acc_ref)

    # First matmul: native-dtype operands (bf16 fast path), f32 MXU accumulation.
    h = jnp.dot(x_ref[...], w1_ref[...], preferred_element_type=jnp.float32)

    # b1 is fully resident; slice the chunk for this d_ff tile.
    if tf_eff == b1_ref.shape[1]:           # single chunk / resident mode
        b1c = b1_ref[...].astype(jnp.float32)
    else:
        start = pl.multiple_of(f * tf_eff, tf_eff)
        b1c = b1_ref[:, pl.ds(start, tf_eff)].astype(jnp.float32)

    h = jnp.maximum(h + b1c, 0.0)           # bias + ReLU (f32)
    # dropout == identity (eval/inference mode)

    # Second matmul: cast hidden back to the compute dtype, accumulate in f32.
    acc_ref[...] += jnp.dot(h.astype(w2_ref.dtype), w2_ref[...],
                            preferred_element_type=jnp.float32)

    @pl.when(f == pl.num_programs(1) - 1)
    def _():
        o_ref[...] = (acc_ref[...] + b2_ref[...].astype(jnp.float32)).astype(o_ref.dtype)


# -----------------------------------------------------------------------------
# Tiling planner (pure Python, runs outside the trace)
# -----------------------------------------------------------------------------
def _plan(M, d_model, d_ff, isz_x, isz_w, tm_req, tf_req, force_stream):
    cap = _vmem_capacity_bytes()
    budget = max(cap - (12 << 20), 24 << 20)

    # Sublane multiple: 8 for f32, 16 for bf16, 32 for int8 (packed sublanes).
    sub = max(8, 32 // max(isz_x, 1))

    def est(tm_e, tf_e, d_ff_p):
        b = 0
        b += 2 * 2 * d_model * tf_e * isz_w      # W1 + W2 tiles, double-buffered
        b += 2 * tm_e * d_model * isz_x          # x tile, double-buffered
        b += 2 * tm_e * d_model * isz_x          # out tile, double-buffered
        b += tm_e * d_model * 4                  # f32 accumulator scratch
        b += tm_e * tf_e * (4 + isz_w)           # f32 hidden slab + its cast copy
        b += 2 * (d_ff_p + d_model) * isz_w      # resident biases
        b += 4 << 20                             # compiler-internal scratch
        return b

    # --- token tile -----------------------------------------------------------
    tm_e = _round_up(min(tm_req, _round_up(M, sub)), sub)
    # Guarantee >= 2 token tiles when possible so the "parallel" axis shards
    # across v7x's two TensorCores (no effect on single-TC v5e/v6e).
    while tm_e > sub and _round_up(M, tm_e) // tm_e < 2:
        tm_e = _round_up(max(sub, tm_e // 2), sub)

    # --- d_ff tiling: weights fully resident if they fit, else 128-mult chunks -
    resident = (not force_stream) and est(tm_e, d_ff, d_ff) <= budget
    if resident:
        d_ff_p, tf_e = d_ff, d_ff
    else:
        d_ff_p = _round_up(d_ff, 128)
        tf_e = 128                               # 128 always divides d_ff_p
        t = 128
        while t <= min(tf_req, d_ff_p):
            if d_ff_p % t == 0:
                tf_e = t
            t += 128

    # --- shrink the token tile if the working set still exceeds the budget -----
    while est(tm_e, tf_e, d_ff_p) > budget and tm_e > max(sub, 128):
        tm_e = _round_up(max(sub, tm_e // 2), sub)

    m_pad = _round_up(M, tm_e)
    vmem_limit = int(min(max(est(tm_e, tf_e, d_ff_p) * 3 // 2, 16 << 20),
                         cap - (8 << 20)))
    return dict(tm_eff=tm_e, tf_eff=tf_e, d_ff_pad=d_ff_p, m_pad=m_pad,
                resident=resident, vmem_limit=vmem_limit)


# -----------------------------------------------------------------------------
# pallas_call wrapper
# -----------------------------------------------------------------------------
@functools.partial(
    jax.jit,
    static_argnames=("tm_eff", "tf_eff", "d_ff_pad", "m_pad", "resident",
                     "vmem_limit"))
def _ffn_impl(x2d, w1, b1, w2, b2, *, tm_eff, tf_eff, d_ff_pad, m_pad, resident,
              vmem_limit):
    M, d_model = x2d.shape
    d_ff = w1.shape[1]

    if m_pad != M:
        x2d = jnp.pad(x2d, ((0, m_pad - M), (0, 0)))
    if d_ff_pad != d_ff:
        # Exact: relu(0 + 0) = 0 and the padded W2 rows are zero, so padded
        # hidden units contribute nothing to the output.
        w1 = jnp.pad(w1, ((0, 0), (0, d_ff_pad - d_ff)))
        b1 = jnp.pad(b1, ((0, 0), (0, d_ff_pad - d_ff)))
        w2 = jnp.pad(w2, ((0, d_ff_pad - d_ff), (0, 0)))

    grid = (m_pad // tm_eff, d_ff_pad // tf_eff)
    isz_x = jnp.dtype(x2d.dtype).itemsize
    isz_w = jnp.dtype(w1.dtype).itemsize

    # Honest traffic estimate: W1/W2 are re-read once per token tile in streamed
    # mode, exactly once in resident mode.
    weight_reads = 1 if resident else grid[0]
    cost = pl.CostEstimate(
        flops=4 * m_pad * d_model * d_ff_pad,
        transcendentals=0,
        bytes_accessed=int(2 * m_pad * d_model * isz_x
                           + weight_reads * (w1.size + w2.size) * isz_w
                           + (b1.size + b2.size) * isz_w),
    )

    out2d = pl.pallas_call(
        functools.partial(ffn_kernel, tf_eff=tf_eff),
        out_shape=jax.ShapeDtypeStruct((m_pad, d_model), x2d.dtype),
        grid_spec=pltpu.PrefetchScalarGridSpec(
            num_scalar_prefetch=0,
            grid=grid,
            in_specs=[
                # x tile: resident across the d_ff axis.
                pl.BlockSpec((tm_eff, d_model), lambda i, f: (i, 0)),
                # W1 chunk: constant block index in resident mode (DMA'd once
                # for the whole grid), streamed (d_model, tf) tiles otherwise.
                # If the weight stream is latency-exposed, sweep
                # pipeline_mode=pl.Buffered(3) here.
                pl.BlockSpec((d_model, tf_eff), lambda i, f: (0, f)),
                # b1: fully resident, sliced per chunk inside the kernel.
                pl.BlockSpec((1, d_ff_pad), lambda i, f: (0, 0)),
                # W2 chunk.
                pl.BlockSpec((tf_eff, d_model), lambda i, f: (f, 0)),
                # b2: resident.
                pl.BlockSpec((1, d_model), lambda i, f: (0, 0)),
            ],
            out_specs=pl.BlockSpec((tm_eff, d_model), lambda i, f: (i, 0)),
            scratch_shapes=[pltpu.VMEM((tm_eff, d_model), jnp.float32)],
        ),
        compiler_params=pltpu.CompilerParams(
            dimension_semantics=("parallel", "arbitrary"),
            vmem_limit_bytes=vmem_limit,
        ),
        cost_estimate=cost,
    )(x2d, w1, b1, w2, b2)
    return out2d


def feed_forward_block(x, w1, b1, w2, b2, *, tm=1024, tf=256, force_stream=False):
    """x: [B, S, d_model] -> [B, S, d_model].

    Weights stored as [in, out] (== PyTorch nn.Linear weight.T);
    b1: [1, d_ff], b2: [1, d_model].
    """
    B, S, d_model = x.shape
    d_ff = w1.shape[1]
    M = B * S
    plan = _plan(M, d_model, d_ff,
                 jnp.dtype(x.dtype).itemsize, jnp.dtype(w1.dtype).itemsize,
                 tm, tf, force_stream)
    out2d = _ffn_impl(x.reshape(M, d_model), w1, b1, w2, b2, **plan)
    return out2d[:M].reshape(B, S, d_model)


# -----------------------------------------------------------------------------
# Reference + tests
# -----------------------------------------------------------------------------
def init_params(key, d_model, d_ff, dtype=jnp.float32):
    """Deterministic init mimicking nn.Linear (uniform +-1/sqrt(fan_in))."""
    k1, k2, k3, k4 = jax.random.split(key, 4)
    bound1 = 1.0 / (d_model ** 0.5)
    bound2 = 1.0 / (d_ff ** 0.5)
    # stored as [in, out] == PyTorch weight.T
    w1 = jax.random.uniform(k1, (d_model, d_ff), dtype, -bound1, bound1)
    b1 = jax.random.uniform(k2, (1, d_ff), dtype, -bound1, bound1)
    w2 = jax.random.uniform(k3, (d_ff, d_model), dtype, -bound2, bound2)
    b2 = jax.random.uniform(k4, (1, d_model), dtype, -bound2, bound2)
    return w1, b1, w2, b2


def _ref_ffn(x, w1, b1, w2, b2):
    xf = x.astype(jnp.float32)
    h = jnp.maximum(xf @ w1.astype(jnp.float32) + b1.astype(jnp.float32)[0], 0.0)
    return h @ w2.astype(jnp.float32) + b2.astype(jnp.float32)


if __name__ == "__main__":
    key = jax.random.PRNGKey(0)
    k_x, k_p = jax.random.split(key)

    # --- small f32 test (weights fully VMEM-resident path) --------------------
    B, S, d_model, d_ff = 2, 8, 32, 64
    x = jax.random.normal(k_x, (B, S, d_model), jnp.float32)
    w1, b1, w2, b2 = init_params(k_p, d_model, d_ff)

    out = jax.block_until_ready(feed_forward_block(x, w1, b1, w2, b2))
    ref = _ref_ffn(x, w1, b1, w2, b2)
    assert out.shape == (B, S, d_model)
    assert jnp.allclose(out, ref, atol=1e-4, rtol=1e-4), "f32 mismatch vs reference"

    # --- bf16 fast path (bf16 operands, f32 accumulation) ---------------------
    xb = x.astype(jnp.bfloat16)
    w1b, b1b, w2b, b2b = (p.astype(jnp.bfloat16) for p in (w1, b1, w2, b2))
    out_bf = jax.block_until_ready(feed_forward_block(xb, w1b, b1b, w2b, b2b))
    ref_bf = _ref_ffn(xb, w1b, b1b, w2b, b2b)
    assert jnp.allclose(out_bf.astype(jnp.float32), ref_bf, atol=5e-2, rtol=5e-2), \
        "bf16 mismatch vs reference"

    # --- non-divisible token count: padding + >=2 token tiles -----------------
    B2, S2 = 3, 5  # M = 15 -> padded, split into 2 token tiles
    x3 = jax.random.normal(jax.random.PRNGKey(1), (B2, S2, d_model), jnp.float32)
    out3 = jax.block_until_ready(feed_forward_block(x3, w1, b1, w2, b2))
    ref3 = _ref_ffn(x3, w1, b1, w2, b2)
    assert jnp.allclose(out3, ref3, atol=1e-4, rtol=1e-4), "padded-M mismatch"

    # --- streamed-weight path with non-128-multiple d_ff (zero-padded) --------
    d_model4, d_ff4 = 128, 192  # d_ff padded to 256, streamed in 128-wide chunks
    x4 = jax.random.normal(jax.random.PRNGKey(2), (2, 16, d_model4), jnp.float32)
    w14, b14, w24, b24 = init_params(jax.random.PRNGKey(3), d_model4, d_ff4)
    out4 = jax.block_until_ready(
        feed_forward_block(x4, w14, b14, w24, b24, tf=128, force_stream=True))
    ref4 = _ref_ffn(x4, w14, b14, w24, b24)
    assert jnp.allclose(out4, ref4, atol=2e-3, rtol=2e-3), \
        "streamed/padded-d_ff mismatch"

    print("KERNEL_OK")
</pallas_src>

<mosaic_0001>
module attributes {stable_mosaic.version = 11 : i64} {
  func.func @ffn_kernel(%arg0: i32, %arg1: i32, %arg2: memref<8x32xf32, #tpu.memory_space<vmem>>, %arg3: memref<32x64xf32, #tpu.memory_space<vmem>>, %arg4: memref<1x64xf32, #tpu.memory_space<vmem>>, %arg5: memref<64x32xf32, #tpu.memory_space<vmem>>, %arg6: memref<1x32xf32, #tpu.memory_space<vmem>>, %arg7: memref<8x32xf32, #tpu.memory_space<vmem>>, %arg8: memref<8x32xf32, #tpu.memory_space<vmem>>) attributes {dimension_semantics = [#tpu.dimension_semantics<parallel>, #tpu.dimension_semantics<arbitrary>], iteration_bounds = array<i64: 2, 1>, scalar_prefetch = 0 : i64, scratch_operands = 1 : i64, tpu.core_type = #tpu.core_type<tc>, window_params = [{transform_indices = @transform_0, window_bounds = array<i64: 8, 32>}, {transform_indices = @transform_1, window_bounds = array<i64: 32, 64>}, {pipeline_mode = #tpu.pipeline_mode<synchronous>, transform_indices = @transform_2, window_bounds = array<i64: 1, 64>}, {transform_indices = @transform_3, window_bounds = array<i64: 64, 32>}, {pipeline_mode = #tpu.pipeline_mode<synchronous>, transform_indices = @transform_4, window_bounds = array<i64: 1, 32>}, {transform_indices = @transform_5, window_bounds = array<i64: 8, 32>}]} {
    %c0_i32 = arith.constant 0 : i32
    %0 = arith.cmpi eq, %arg1, %c0_i32 : i32
    %1 = arith.extui %0 : i1 to i32
    %c0_i32_0 = arith.constant 0 : i32
    %2 = arith.cmpi ne, %1, %c0_i32_0 : i32
    scf.if %2 {
      %cst_16 = arith.constant 0.000000e+00 : f32
      %19 = vector.broadcast %cst_16 : f32 to vector<8x32xf32>
      %c0_17 = arith.constant 0 : index
      %c0_18 = arith.constant 0 : index
      %20 = vector.load %arg8[%c0_17, %c0_18] : memref<8x32xf32, #tpu.memory_space<vmem>>, vector<8x32xf32>
      tpu.vector_store %arg8[%c0_17, %c0_18], %19 {strides = array<i32>} : memref<8x32xf32, #tpu.memory_space<vmem>>, vector<8x32xf32>,
    } else {
    }
    %c0 = arith.constant 0 : index
    %c0_1 = arith.constant 0 : index
    %3 = vector.load %arg2[%c0, %c0_1] : memref<8x32xf32, #tpu.memory_space<vmem>>, vector<8x32xf32>
    %c0_2 = arith.constant 0 : index
    %c0_3 = arith.constant 0 : index
    %4 = vector.load %arg3[%c0_2, %c0_3] : memref<32x64xf32, #tpu.memory_space<vmem>>, vector<32x64xf32>
    %cst = arith.constant dense<0.000000e+00> : vector<8x64xf32>
    %5 = tpu.matmul %3, %4, %cst {dimension_numbers = #tpu.dot_dimension_numbers<[1], [0], [0], [1], [0, 0, 1, 1], [], []>} : vector<8x32xf32>, vector<32x64xf32>, vector<8x64xf32> -> vector<8x64xf32>
    %c0_4 = arith.constant 0 : index
    %c0_5 = arith.constant 0 : index
    %6 = vector.load %arg4[%c0_4, %c0_5] : memref<1x64xf32, #tpu.memory_space<vmem>>, vector<1x64xf32>
    %7 = vector.broadcast %6 : vector<1x64xf32> to vector<8x64xf32>
    %8 = arith.addf %5, %7 : vector<8x64xf32>
    %cst_6 = arith.constant 0.000000e+00 : f32
    %9 = vector.broadcast %cst_6 : f32 to vector<8x64xf32>
    %10 = arith.maximumf %8, %9 : vector<8x64xf32>
    %c0_7 = arith.constant 0 : index
    %c0_8 = arith.constant 0 : index
    %11 = vector.load %arg8[%c0_7, %c0_8] : memref<8x32xf32, #tpu.memory_space<vmem>>, vector<8x32xf32>
    %c0_9 = arith.constant 0 : index
    %c0_10 = arith.constant 0 : index
    %12 = vector.load %arg5[%c0_9, %c0_10] : memref<64x32xf32, #tpu.memory_space<vmem>>, vector<64x32xf32>
    %cst_11 = arith.constant dense<0.000000e+00> : vector<8x32xf32>
    %13 = tpu.matmul %10, %12, %cst_11 {dimension_numbers = #tpu.dot_dimension_numbers<[1], [0], [0], [1], [0, 0, 1, 1], [], []>} : vector<8x64xf32>, vector<64x32xf32>, vector<8x32xf32> -> vector<8x32xf32>
    %14 = arith.addf %11, %13 : vector<8x32xf32>
    %c0_12 = arith.constant 0 : index
    %c0_13 = arith.constant 0 : index
    %15 = vector.load %arg8[%c0_12, %c0_13] : memref<8x32xf32, #tpu.memory_space<vmem>>, vector<8x32xf32>
    tpu.vector_store %arg8[%c0_12, %c0_13], %14 {strides = array<i32>} : memref<8x32xf32, #tpu.memory_space<vmem>>, vector<8x32xf32>,
    %c0_i32_14 = arith.constant 0 : i32
    %16 = arith.cmpi eq, %arg1, %c0_i32_14 : i32
    %17 = arith.extui %16 : i1 to i32
    %c0_i32_15 = arith.constant 0 : i32
    %18 = arith.cmpi ne, %17, %c0_i32_15 : i32
    scf.if %18 {
      %c0_16 = arith.constant 0 : index
      %c0_17 = arith.constant 0 : index
      %19 = vector.load %arg8[%c0_16, %c0_17] : memref<8x32xf32, #tpu.memory_space<vmem>>, vector<8x32xf32>
      %c0_18 = arith.constant 0 : index
      %c0_19 = arith.constant 0 : index
      %20 = vector.load %arg6[%c0_18, %c0_19] : memref<1x32xf32, #tpu.memory_space<vmem>>, vector<1x32xf32>
      %21 = vector.broadcast %20 : vector<1x32xf32> to vector<8x32xf32>
      %22 = arith.addf %19, %21 : vector<8x32xf32>
      %c0_20 = arith.constant 0 : index
      %c0_21 = arith.constant 0 : index
      %23 = vector.load %arg7[%c0_20, %c0_21] : memref<8x32xf32, #tpu.memory_space<vmem>>, vector<8x32xf32>
      tpu.vector_store %arg7[%c0_20, %c0_21], %22 {strides = array<i32>} : memref<8x32xf32, #tpu.memory_space<vmem>>, vector<8x32xf32>,
    } else {
    }
    return
  }
  func.func @transform_0(%arg0: i32, %arg1: i32) -> (i32, i32) {
    %c0_i32 = arith.constant 0 : i32
    %c0_i32_0 = arith.constant 0 : i32
    return %arg0, %c0_i32 : i32, i32
  }
  func.func @transform_1(%arg0: i32, %arg1: i32) -> (i32, i32) {
    %c0_i32 = arith.constant 0 : i32
    %c0_i32_0 = arith.constant 0 : i32
    return %c0_i32, %arg1 : i32, i32
  }
  func.func @transform_2(%arg0: i32, %arg1: i32) -> (i32, i32) {
    %c0_i32 = arith.constant 0 : i32
    %c0_i32_0 = arith.constant 0 : i32
    %c0_i32_1 = arith.constant 0 : i32
    return %c0_i32, %c0_i32_0 : i32, i32
  }
  func.func @transform_3(%arg0: i32, %arg1: i32) -> (i32, i32) {
    %c0_i32 = arith.constant 0 : i32
    %c0_i32_0 = arith.constant 0 : i32
    return %arg1, %c0_i32 : i32, i32
  }
  func.func @transform_4(%arg0: i32, %arg1: i32) -> (i32, i32) {
    %c0_i32 = arith.constant 0 : i32
    %c0_i32_0 = arith.constant 0 : i32
    %c0_i32_1 = arith.constant 0 : i32
    return %c0_i32, %c0_i32_0 : i32, i32
  }
  func.func @transform_5(%arg0: i32, %arg1: i32) -> (i32, i32) {
    %c0_i32 = arith.constant 0 : i32
    %c0_i32_0 = arith.constant 0 : i32
    return %arg0, %c0_i32 : i32, i32
  }
}

</mosaic_0001>

<bundles_post_ra>
// kernel: _ffn_impl.1
= control target key start
LH: loop header
LB: loop body
LE: loop exit
PB: predicated region body
PF: predicated region fallthrough
CT: control target
= control target key end

     0   :  { %10 = vsyncpa [#allocation4], 0  ;;  %s982_s0 = inlined_call_operand.vmem [shape: f32[16,32], index: 0, kind: input, shape index: {}]   ;;  %s983_s1 = inlined_call_operand.vmem [shape: f32[32,64], index: 1, kind: input, shape index: {}]   ;;  %s984_s2 = inlined_call_operand.vmem [shape: f32[1,64], index: 2, kind: input, shape index: {}]   ;;  %s985_s3 = inlined_call_operand.vmem [shape: f32[64,32], index: 3, kind: input, shape index: {}]   ;;  %s986_s4 = inlined_call_operand.vmem [shape: f32[1,32], index: 4, kind: input, shape index: {}]   ;;  %s987_s5 = inlined_call_operand.hbm [shape: f32[16,32], index: 5, kind: output, shape index: {}]  }
   0x1   :  { %12 = vsyncpa [#allocation4 + $0x1], 0  ;;  %s824_s18 = smov 0   ;;  %s826_s19 = smov 0  }
   0x2   :  { %s828_s20 = smov 0   ;;  %s830_s21 = smov 0  }
   0x3   :  { %s832_s22 = smov 0   ;;  %s834_s23 = smov 0  }
   0x4 LB: > { %s573_s24 = sadd.s32 4294967295, %s788_s23   ;;  %s574_s25 = sadd.s32 4294967294, %s788_s23   ;;  %s788_s23 = sphi %s834_s23, %s18_s23   ;;  %s784_s22 = sphi %s832_s22, %s994_s22   ;;  %s780_s21 = sphi %s830_s21, %s993_s21   ;;  %s776_s20 = sphi %s828_s20, %s992_s20   ;;  %s772_s19 = sphi %s826_s19, %s991_s19   ;;  %s768_s18 = sphi %s824_s18, %s990_s18  }
   0x5   : > { %s30_s26 = sadd.s32 1, %s784_s22  ;;  %s157_s27 = sadd.s32 1, %s776_s20 }
   0x6   : > { %p32_p0 = scmp.ge.s32.totalorder %s30_s26, 2  ;;  %p167_p1 = scmp.ne.s32.totalorder %s776_s20, %s772_s19 }
   0x7   : > { %p168_p2 = scmp.eq.s32.totalorder %s573_s24, 1  ;;  %p173_p3 = scmp.ne.s32.totalorder %s772_s19, %s768_s18 }
   0x8   : > { %s996_s26 = smov (%p32_p0, %s30_s26), 0  ;;  %p174_p5 = scmp.eq.s32.totalorder %s574_s25, 1 }
   0x9   : > { %p864_p4 = por %p168_p2, %p167_p1  ;;  %s154_s29 = ssub.s32 %s784_s22, %s996_s26 }
   0xa   : > { %p579_p6 = scmp.ge.s32.totalorder %s788_s23, 1  ;;  %p155_p7 = scmp.eq.s32.totalorder %s154_s29, 0 }
   0xb   : > { %p871_p8 = por %p174_p5, %p173_p3  ;;  %p221_p9 = scmp.lt.s32.totalorder %s788_s23, 3 }
   0xc   : > { %s877_s6 = scalar_select %p155_p7, %s776_s20, %s157_s27  }
   0xd   : > { %p222_p10 = pnand %p579_p6, %p221_p9 }
   0xe   : > { %v278_v0 = vld [vmem:[%s983_s1] sm:$0xff] (!%p222_p10)  ;;  %v279_v1 = vld [vmem:[%s983_s1 + $0x8] sm:$0xff] (!%p222_p10)  ;;  %v280_v2 = vld [vmem:[%s983_s1 + $0x10] sm:$0xff] (!%p222_p10)  ;;  %v790_v3 = vmov (!%p222_p10), 0.0|0.0   ;;  %vm791_vm0 = vmmov (!%p222_p10), 0   ;;  %v792_v6 = vmov (!%p222_p10), 0.0  }
   0xf   : > { %225 = sbr.rel (%p222_p10) target bundleno = 481 (0x1e1), region = 40  ;;  %634 = vmatprep.subr.bf16.mxu0 (!%p222_p10), %v790_v3  ;;  %v635_v4 = vpack.c.bf16 (!%p222_p10), %v279_v1, %v278_v0  ;;  %v281_v5 = vld [vmem:[%s983_s1 + $0x18] sm:$0xff] (!%p222_p10)  ;;  %612 = vmatprep.mubr.msk.f32.mxu0 (!%p222_p10), %vm791_vm0, %v792_v6  ;;  %p257_p11 = scmp.lt.s32.totalorder (!%p222_p10), %s780_s21, 1  ;;  %vm275_vm1 = vcmask (!%p222_p10), 261120   ;;  %v365_v7 = vld [vmem:[%s985_s3] sm:$0xff] (!%p222_p10)  ;;  %v366_v8 = vld [vmem:[%s985_s3 + $0x8] sm:$0xff] (!%p222_p10) }
  0x10   : > { %276 = vst.msk [vmem:[#allocation2] sm:$0xff] (!%p222_p10), %vm275_vm1, %v792_v6  ;;  %640 = vmatprep.subr.bf16.mxu1 (!%p222_p10), %v790_v3  ;;  %v641_v9 = vpack.c.bf16 (!%p222_p10), %v366_v8, %v365_v7  ;;  %v367_v10 = vld [vmem:[%s985_s3 + $0x10] sm:$0xff] (!%p222_p10)  ;;  %v368_v11 = vld [vmem:[%s985_s3 + $0x18] sm:$0xff] (!%p222_p10)  ;;  %631 = vmatprep.mubr.msk.f32.mxu1 (!%p222_p10), %vm791_vm0, %v792_v6  ;;  %v638_v12 = vpack.c.bf16 (!%p222_p10), %v281_v5, %v280_v2  ;;  %v369_v14 = vld [vmem:[%s985_s3 + $0x20] sm:$0xff] (!%p222_p10)  ;;  %vm373_vm2 = vcmask (!%p222_p10), 523264   ;;  %s587_s12 = sshll.u32 (!%p222_p10), %s780_s21, 7 }
  0x11   : > { %636 = vmatpush3.bf16.msra.mxu0 (!%p222_p10), %v635_v4  ;;  %v644_v13 = vpack.c.bf16 (!%p222_p10), %v368_v11, %v367_v10  ;;  %v370_v15 = vld [vmem:[%s985_s3 + $0x28] sm:$0xff] (!%p222_p10)  ;;  %v371_v18 = vld [vmem:[%s985_s3 + $0x30] sm:$0xff] (!%p222_p10)  ;;  %v372_v19 = vld [vmem:[%s985_s3 + $0x38] sm:$0xff] (!%p222_p10)  ;;  %s934_s17 = scalar_lea.hbm (!%p222_p10), %s987_s5, %s587_s12 }
  0x12   : > { %637 = vmatprep.subr.bf16.mxu0 (!%p222_p10), %v790_v3  ;;  %642 = vmatpush3.bf16.msra.mxu1 (!%p222_p10), %v641_v9  ;;  %v647_v17 = vpack.c.bf16 (!%p222_p10), %v370_v15, %v369_v14  ;;  %v650_v20 = vpack.c.bf16 (!%p222_p10), %v372_v19, %v371_v18  ;;  %v582_v21 = vld [vmem:[%s984_s2] ss:$0 sm:$0xff] (!%p222_p10) }
  0x13   : > { %643 = vmatprep.subr.bf16.mxu1 (!%p222_p10), %v790_v3  ;;  %v585_v30 = vld [vmem:[%s986_s4] ss:$0 sm:$0xff] (!%p222_p10) }
  0x15   : > { %639 = vmatpush3.bf16.msra.mxu0 (!%p222_p10), %v638_v12 }
  0x16   : > { %s258_s8 = scalar_select %p257_p11, %s780_s21, 1  ;;  %645 = vmatpush3.bf16.msra.mxu1 %v644_v13 }
  0x17   : > { %646 = vmatprep.subr.bf16.mxu1 %v790_v3  ;;  %v364_v26 = vld [vmem:[#allocation2] sm:$0xff]  ;;  %s793_s21 = smov [#allocation3]  }
  0x18   : > { %s581_s9 = sshll.u32 %s258_s8, 3  ;;  %s254_s8 = sand.u32 1, %s772_s19  }
  0x19   : > { %s260_s16 = scalar_lea.vmem %s982_s0, %s581_s9  ;;  %s580_s9 = sshll.u32 %s254_s8, 3 }
  0x1a   : > { %v277_v16 = vld [vmem:[%s260_s16] sm:$0xff]  ;;  %648 = vmatpush3.bf16.msra.mxu1 %v647_v17  ;;  %s256_s13 = scalar_lea.vmem [#allocation3], %s580_s9  ;;  %s463_s24 = scalar_lea.sflag [#allocation4], %s254_s8 }
  0x1b   : > { %613 = vmatmul.mubr.msk.f32.vlgmr.msra.gmra.mrb[0].mxu0 %vm275_vm1, %v277_v16  ;;  %649 = vmatprep.subr.bf16.mxu1 %v790_v3  ;;  %s476_s14 = sshll.u32 %s256_s13, 4  ;;  %s714_s27 = sshll.u32 %s793_s21, 4  ;;  %s936_s14 = int_to_ptr.vmem [resolvable:$true] %s476_s14  ;;  %s715_s27 = int_to_ptr.vmem [resolvable:$false] %s714_s27 }
  0x1c   : > { %s710_s25 = scalar_lea.vmem %s936_s14, 128  ;;  %s716_s29 = scalar_lea.vmem %s715_s27, 256 }
  0x1d   : > { %p711_p12 = scmp.ne.s32.totalorder %s936_s14, %s710_s25  ;;  %p717_p1 = scmp.lt.s32.totalorder %s936_s14, %s715_s27 }
  0x1e   : > { %651 = vmatpush3.bf16.msra.mxu1 %v650_v20  ;;  %p718_p2 = scmp.lt.s32.totalorder %s716_s29, %s710_s25 }
  0x1f   : > { %p712_p13 = pnand %p711_p12, %p864_p4 }
  0x20   : > { %p719_p3 = por %p718_p2, %p717_p1 }
  0x21   : > { %p713_p0 = pneg %p712_p13 }
  0x23   : > { %p720_p5 = pnand %p719_p3, %p713_p0 }
  0xee   : > { %v359_v22 = vpop.f32.mrb[0].mxu0 }
  0xef   : > { %v360_v23 = vadd.f32 %v582_v21, %v359_v22  ;;  %v614_v24 = vpop.f32.mrb[1].mxu0 }
  0xf1   : > { %v363_v25 = vmax.f32 %v360_v23, 0.0 }
  0xf3   : > { %632 = vmatmul.mubr.msk.f32.vlgmr.msra.gmra.mrb[0].mxu1 %vm373_vm2, %v363_v25 }
 0x1c6   : > { %v443_v27 = vpop.f32.mrb[0].mxu1 }
 0x1c7   : > { %v447_v28 = vadd.f32 %v443_v27, %v364_v26  ;;  %v633_v29 = vpop.f32.mrb[1].mxu1 }
 0x1c9   : > { %448 = vst.msk [vmem:[#allocation2] sm:$0xff] %vm275_vm1, %v447_v28 }
 0x1d0   : > { %v452_v31 = vld [vmem:[#allocation2] sm:$0xff] }
 0x1d1   : > { %v460_v32 = vadd.f32 %v585_v30, %v452_v31 }
 0x1d3   : > { %461 = vst.msk [vmem:[%s256_s13] sm:$0xff] %vm275_vm1, %v460_v32 }
 0x1d4   : > { %723 = shalt.err (!%p720_p5)
}
 0x1d5   : > { %s724_s7 = scalar_lea.hbm %s934_s17, 128  ;;  %s728_s10 = scalar_lea.hbm %s987_s5, 256 }
 0x1d6   : > { %p725_p6 = scmp.ne.s32.totalorder %s934_s17, %s724_s7  ;;  %p729_p10 = scmp.lt.u32.totalorder %s934_s17, %s987_s5 }
 0x1d7   : > { %p730_p11 = scmp.lt.u32.totalorder %s728_s10, %s724_s7  ;;  %p732_p13 = scmp.lt.u32.totalorder %s724_s7, %s934_s17 }
 0x1d8   : > { %p726_p7 = pnand %p725_p6, %p864_p4 }
 0x1d9   : > { %p731_p12 = por %p730_p11, %p729_p10 }
 0x1da   : > { %p727_p9 = pneg %p726_p7 }
 0x1db   : > { %p733_p0 = por %p732_p13, %p731_p12 }
 0x1dd   : > { %p734_p1 = pnand %p733_p0, %p727_p9 }
 0x1df   : > { %737 = shalt.err (!%p734_p1)
}
 0x1e0   : > { %652 = dma.vmem_to_hbm [thread:$0]  (%p864_p4), %s936_s14, 128, %s934_s17, %s463_s24  }
 0x1e1 PF: > { %p658_p2 = scmp.ge.s32.totalorder %s788_s23, 2  ;;  %s488_s13 = sand.u32 1, %s768_s18  }
 0x1e2   : > { %s489_s15 = scalar_lea.sflag [#allocation4], %s488_s13 }
 0x1e3   : > { %p655_p3 = pnand %p658_p2, %p871_p8 }
 0x1e5   : > { %763 = dma.done.wait (!%p655_p3), %s489_s15, 128  }
 0x1e6   : > { %765 = vsyncadd (!%p655_p3), %s489_s15, 4294967168  ;;  %s18_s23 = sadd.s32 1, %s788_s23   ;;  %s990_s18 = smov %s772_s19 }
 0x1e7   : > { %p15_p5 = scmp.ge.s32.totalorder %s18_s23, 4   ;;  %s991_s19 = smov %s776_s20 }
 0x1e8   : > { %s992_s20 = smov %s877_s6  ;;  %s993_s21 = smov %s784_s22 }
 0x1e9   : > { %s994_s22 = smov %s996_s26  ;;  %17 = sbr.rel (!%p15_p5) target bundleno = 4 (0x4), region = 89 }
 0x1f0   :  { %494 = vsyncpa [#allocation4], 1 }
 0x1f1   :  { %496 = vsyncpa [#allocation4 + $0x1], 1 }

</bundles_post_ra>
